<compile_context>
chip_gen: v6e
topology: v6e:2x2x1
jax: 0.10.0
libtpu: 0.0.40
codegen_flags: <defaults>
</compile_context>

<pallas_src>
import functools

import jax
import jax.numpy as jnp
from jax.experimental import pallas as pl
from jax.experimental.pallas import tpu as pltpu


# ---------------------------------------------------------------------------
# Helpers
# ---------------------------------------------------------------------------
def _round_up(x, m):
    return ((x + m - 1) // m) * m


def _cdiv(a, b):
    return (a + b - 1) // b


def _vmem_budget():
    """(tile-selection budget, compiler vmem_limit_bytes) derived per chip."""
    try:
        cap = int(pltpu.get_tpu_info().vmem_capacity_bytes)
    except Exception:
        cap = 64 << 20  # conservative fallback (v7x-sized)
    budget = min(cap // 2, 80 << 20)          # working-set budget for tiles
    vmem_limit = min(int(cap * 0.7), 112 << 20)  # scoped limit with headroom
    return budget, vmem_limit


def _resident_block_spec(shape, index_map, resident):
    """BlockSpec; single-buffered (Buffered(1)) when its block index is constant."""
    if resident:
        try:
            return pl.BlockSpec(shape, index_map, pipeline_mode=pl.Buffered(1))
        except Exception:
            pass  # older JAX: fall back to default double-buffering
    return pl.BlockSpec(shape, index_map)


def _choose_tiles(B, F, Cpad, x_itemsize, w_itemsize, o_itemsize, budget):
    """Pick (batch tile tm, class tile tn) that fit the VMEM budget."""
    sublane = 16 if x_itemsize < 4 else 8

    # Class tile: whole weight resident if comfortably small, else stream it.
    w_total = F * Cpad * w_itemsize
    if w_total <= budget // 3:
        tn = Cpad
    else:
        tn = 128
        for cand in (8192, 4096, 2048, 1024, 512, 256):
            if Cpad % cand == 0 and 2 * F * cand * w_itemsize <= budget // 2:
                tn = cand
                break
    w_bufs = 1 if tn == Cpad else 2

    # Batch tile: largest tile whose double-buffered x/out traffic fits next
    # to the weight working set.
    rem = budget - w_bufs * (F * tn * w_itemsize + tn * 4)
    per_row = 2 * (F * x_itemsize + tn * o_itemsize)
    max_rows = max(sublane, rem // per_row)
    tm = sublane
    for cand in (1024, 512, 256, 128, 64, 32, 16, 8):
        if cand % sublane == 0 and cand <= max_rows:
            tm = cand
            break
    # Don't over-pad tiny batches.
    tm = min(tm, _round_up(B, sublane))
    return tm, tn


# ---------------------------------------------------------------------------
# Kernel
# ---------------------------------------------------------------------------
def linear_kernel(x_ref, wt_ref, b_ref, o_ref):
    # x_ref:  (tm, F)   VMEM (bf16) -- streamed batch tile
    # wt_ref: (F,  tn)  VMEM (bf16) -- resident or streamed class tile
    # b_ref:  (1,  tn)  VMEM (f32)
    # o_ref:  (tm, tn)  VMEM        -- lane-dense output tile
    acc = jnp.dot(x_ref[...], wt_ref[...], preferred_element_type=jnp.float32)
    o_ref[...] = (acc + b_ref[...]).astype(o_ref.dtype)


# ---------------------------------------------------------------------------
# One-time parameter preparation (amortizes transpose + padding + bf16 cast)
# ---------------------------------------------------------------------------
def prepare_classifier_params(weight, bias, param_dtype=jnp.bfloat16):
    """weight [C, F], bias [C] (PyTorch layout) -> (wt [F, Cpad] param_dtype,
    bias [1, Cpad] f32) with Cpad = round_up(C, 128), padded columns zero."""
    C, F = weight.shape
    Cpad = _round_up(C, 128)
    wt = (jnp.zeros((F, Cpad), dtype=param_dtype)
          .at[:, :C].set(weight.T.astype(param_dtype)))
    b = (jnp.zeros((1, Cpad), dtype=jnp.float32)
         .at[0, :C].set(bias.astype(jnp.float32)))
    return wt, b


# ---------------------------------------------------------------------------
# Forward wrapper
# ---------------------------------------------------------------------------
@functools.partial(jax.jit, static_argnames=("class_num", "trim_output"))
def classifier_forward(x, wt_padded, bias_padded, class_num, trim_output=True):
    """y = x @ W.T + b (nn.Linear semantics) with pre-prepared params.

    x:           [B, in_features] (f32 or bf16)
    wt_padded:   [in_features, Cpad]  (from prepare_classifier_params)
    bias_padded: [1, Cpad] f32
    returns [B, class_num] (x.dtype), or the padded [Bp, Cpad] slab if
    trim_output=False (padded columns are zero).
    """
    B, F = x.shape
    Fw, Cpad = wt_padded.shape
    assert Fw == F, "weight / input feature mismatch"

    w_dtype = wt_padded.dtype
    out_dtype = x.dtype
    # Cast activations to the weight dtype (bf16) for the fast MXU path;
    # accumulation stays f32 inside the kernel.
    x_in = x if x.dtype == w_dtype else x.astype(w_dtype)

    budget, vmem_limit = _vmem_budget()
    tm, tn = _choose_tiles(
        B, F, Cpad,
        x_itemsize=x_in.dtype.itemsize,
        w_itemsize=w_dtype.itemsize,
        o_itemsize=jnp.dtype(out_dtype).itemsize,
        budget=budget,
    )
    w_resident = (tn == Cpad)

    # v7x: if the whole job would be a single grid step, split the class axis
    # so both TensorCores get work (halves per-core weight residency too).
    if w_resident and _cdiv(B, tm) == 1 and Cpad % 256 == 0:
        tn = Cpad // 2
        w_resident = False

    num_class_tiles = Cpad // tn
    Bp = _round_up(B, tm)
    if Bp != B:
        x_in = jnp.pad(x_in, ((0, Bp - B), (0, 0)))
    num_batch_tiles = Bp // tm

    cost = pl.CostEstimate(
        flops=2 * Bp * F * Cpad,
        transcendentals=0,
        bytes_accessed=(Bp * F * x_in.dtype.itemsize
                        + F * Cpad * w_dtype.itemsize
                        + Cpad * 4
                        + Bp * Cpad * jnp.dtype(out_dtype).itemsize),
    )

    out = pl.pallas_call(
        linear_kernel,
        out_shape=jax.ShapeDtypeStruct((Bp, Cpad), out_dtype),
        grid_spec=pltpu.PrefetchScalarGridSpec(
            num_scalar_prefetch=0,
            # Class axis outer (weight tile constant over the inner batch loop,
            # so a streamed weight is read once total); batch axis inner.
            grid=(num_class_tiles, num_batch_tiles),
            in_specs=[
                pl.BlockSpec((tm, F), lambda j, i: (i, 0)),             # x tile
                _resident_block_spec((F, tn), lambda j, i: (0, j),      # weight
                                     w_resident),
                _resident_block_spec((1, tn), lambda j, i: (0, j),      # bias
                                     w_resident),
            ],
            out_specs=pl.BlockSpec((tm, tn), lambda j, i: (i, j)),
        ),
        compiler_params=pltpu.CompilerParams(
            dimension_semantics=("parallel", "parallel"),
            vmem_limit_bytes=vmem_limit,
        ),
        cost_estimate=cost,
    )(x_in, wt_padded, bias_padded)

    if trim_output:
        out = out[:B, :class_num]
    return out


# ---------------------------------------------------------------------------
# Init matching weights_init_classifier (Linear: weight ~ N(0, 0.001), bias 0)
# ---------------------------------------------------------------------------
def init_classifier_params(key, in_features, class_num):
    w = jax.random.normal(key, (class_num, in_features), dtype=jnp.float32) * 0.001
    b = jnp.zeros((class_num,), dtype=jnp.float32)
    return w, b


if __name__ == "__main__":
    key = jax.random.PRNGKey(0)
    k_x, k_w = jax.random.split(key)

    batch = 8
    in_features = 32
    class_num = 10

    x = jax.random.normal(k_x, (batch, in_features), dtype=jnp.float32)
    weight, bias = init_classifier_params(k_w, in_features, class_num)

    # One-time layout prep (transpose + lane padding + bf16 cast).
    wt_padded, bias_padded = prepare_classifier_params(weight, bias)

    out = classifier_forward(x, wt_padded, bias_padded, class_num)
    jax.block_until_ready(out)
    assert out.shape == (batch, class_num)

    # Reference with the same bf16 rounding of inputs/weights, f32 accumulate.
    x_bf = x.astype(jnp.bfloat16).astype(jnp.float32)
    w_bf = weight.astype(jnp.bfloat16).astype(jnp.float32)
    ref = x_bf @ w_bf.T + bias
    assert jnp.allclose(out, ref, atol=1e-5, rtol=1e-4), float(
        jnp.max(jnp.abs(out - ref)))

    # Loose sanity check against the exact f32 nn.Linear result.
    ref_f32 = x @ weight.T + bias
    assert jnp.allclose(out, ref_f32, atol=1e-3, rtol=5e-2)

    print("KERNEL_OK")
</pallas_src>

<mosaic_0001>
module attributes {stable_mosaic.version = 11 : i64} {
  func.func @linear_kernel(%arg0: i32, %arg1: i32, %arg2: memref<16x32xbf16, #tpu.memory_space<vmem>>, %arg3: memref<32x128xbf16, #tpu.memory_space<vmem>>, %arg4: memref<1x128xf32, #tpu.memory_space<vmem>>, %arg5: memref<16x128xf32, #tpu.memory_space<vmem>>) attributes {dimension_semantics = [#tpu.dimension_semantics<parallel>, #tpu.dimension_semantics<parallel>], iteration_bounds = array<i64: 1, 1>, scalar_prefetch = 0 : i64, scratch_operands = 0 : i64, tpu.core_type = #tpu.core_type<tc>, window_params = [{transform_indices = @transform_0, window_bounds = array<i64: 16, 32>}, {pipeline_mode = #tpu.pipeline_mode<synchronous>, transform_indices = @transform_1, window_bounds = array<i64: 32, 128>}, {pipeline_mode = #tpu.pipeline_mode<synchronous>, transform_indices = @transform_2, window_bounds = array<i64: 1, 128>}, {transform_indices = @transform_3, window_bounds = array<i64: 16, 128>}]} {
    %c0 = arith.constant 0 : index
    %c0_0 = arith.constant 0 : index
    %0 = vector.load %arg2[%c0, %c0_0] : memref<16x32xbf16, #tpu.memory_space<vmem>>, vector<16x32xbf16>
    %c0_1 = arith.constant 0 : index
    %c0_2 = arith.constant 0 : index
    %1 = vector.load %arg3[%c0_1, %c0_2] : memref<32x128xbf16, #tpu.memory_space<vmem>>, vector<32x128xbf16>
    %cst = arith.constant dense<0.000000e+00> : vector<16x128xf32>
    %2 = tpu.matmul %0, %1, %cst {dimension_numbers = #tpu.dot_dimension_numbers<[1], [0], [0], [1], [0, 0, 1, 1], [], []>} : vector<16x32xbf16>, vector<32x128xbf16>, vector<16x128xf32> -> vector<16x128xf32>
    %c0_3 = arith.constant 0 : index
    %c0_4 = arith.constant 0 : index
    %3 = vector.load %arg4[%c0_3, %c0_4] : memref<1x128xf32, #tpu.memory_space<vmem>>, vector<1x128xf32>
    %4 = vector.broadcast %3 : vector<1x128xf32> to vector<16x128xf32>
    %5 = arith.addf %2, %4 : vector<16x128xf32>
    %c0_5 = arith.constant 0 : index
    %c0_6 = arith.constant 0 : index
    %6 = vector.load %arg5[%c0_5, %c0_6] : memref<16x128xf32, #tpu.memory_space<vmem>>, vector<16x128xf32>
    tpu.vector_store %arg5[%c0_5, %c0_6], %5 {strides = array<i32>} : memref<16x128xf32, #tpu.memory_space<vmem>>, vector<16x128xf32>,
    return
  }
  func.func @transform_0(%arg0: i32, %arg1: i32) -> (i32, i32) {
    %c0_i32 = arith.constant 0 : i32
    %c0_i32_0 = arith.constant 0 : i32
    return %arg1, %c0_i32 : i32, i32
  }
  func.func @transform_1(%arg0: i32, %arg1: i32) -> (i32, i32) {
    %c0_i32 = arith.constant 0 : i32
    %c0_i32_0 = arith.constant 0 : i32
    return %c0_i32, %arg0 : i32, i32
  }
  func.func @transform_2(%arg0: i32, %arg1: i32) -> (i32, i32) {
    %c0_i32 = arith.constant 0 : i32
    %c0_i32_0 = arith.constant 0 : i32
    return %c0_i32, %arg0 : i32, i32
  }
  func.func @transform_3(%arg0: i32, %arg1: i32) -> (i32, i32) {
    %c0_i32 = arith.constant 0 : i32
    return %arg1, %arg0 : i32, i32
  }
}

</mosaic_0001>

<bundles_post_ra>
// kernel: classifier_forward.1
= control target key start
LH: loop header
LB: loop body
LE: loop exit
PB: predicated region body
PF: predicated region fallthrough
CT: control target
= control target key end

     0   :  { %v117_v0 = vmov 0.0   ;;  %vm118_vm0 = vmmov 0   ;;  %vm45_vm1 = vcmask 261120   ;;  %s157_s1 = inlined_call_operand.vmem [shape: bf16[32,128], index: 1, kind: input, shape index: {}]   ;;  %s158_s0 = inlined_call_operand.vmem [shape: bf16[16,32], index: 0, kind: input, shape index: {}]   ;;  %s159_s2 = inlined_call_operand.vmem [shape: f32[1,128], index: 2, kind: input, shape index: {}]   ;;  %s160_s3 = inlined_call_operand.vmem [shape: f32[16,128], index: 3, kind: output, shape index: {}]  }
   0x1   :  { %104 = vmatprep.subr.bf16.mxu0 %v117_v0  ;;  %v114_v1 = vld [vmem:[%s157_s1 + $0x8] sm:$0xff]   ;;  %108 = vmatprep.mubr.msk.bf16.mxu0 %vm118_vm0, %v117_v0  ;;  %v115_v2 = vld [vmem:[%s157_s1] sm:$0xff]  }
   0x2   :  { %105 = vmatpush3.bf16.msra.mxu0 %v114_v1  ;;  %v116_v3 = vld [vmem:[%s158_s0] sm:$0xff]  }
   0x3   :  { %106 = vmatprep.subr.bf16.mxu0 %v117_v0  ;;  %v96_v4 = vld [vmem:[%s159_s2] ss:$0 sm:$0xff] }
   0x6   :  { %107 = vmatpush3.bf16.msra.mxu0 %v115_v2 }
   0x9   :  { %109 = vmatmul.mubr.msk.bf16.vlgmr.msra.gmra.mxu0 %vm45_vm1, %v116_v3 }
  0xc9   :  { %v83_v5 = vpop.f32.mrf.mxu0 }
  0xca   :  { %v84_v6 = vadd.f32 %v96_v4, %v83_v5 }
  0xcb   :  { %v110_v7 = vpop.f32.mrf.mxu0 }
  0xcc   :  { %90 = vst [vmem:[%s160_s3] sm:$0xff] %v84_v6 }
  0xcd   :  { %v86_v8 = vpop.f32.mrf.mxu0 }
  0xce   :  { %v87_v9 = vadd.f32 %v96_v4, %v86_v8 }
  0xcf   :  { %v111_v10 = vpop.f32.mrf.mxu0 }
  0xd0   :  { %91 = vst [vmem:[%s160_s3 + $0x8] sm:$0xff] %v87_v9 }

</bundles_post_ra>
